<compile_context>
chip_gen: v7x
topology: tpu7x:2x2x1
jax: 0.10.0
libtpu: 0.0.40
codegen_flags: <defaults>
</compile_context>

<pallas_src>
import jax
import jax.numpy as jnp
from jax.experimental import pallas as pl
from jax.experimental.pallas import tpu as pltpu


def _round_up(x, m):
    return (x + m - 1) // m * m


# ---------------------------------------------------------------------------
# Pallas kernels
# ---------------------------------------------------------------------------
def _proj_kernel_single_k(x_ref, w_ref, b_ref, o_ref):
    # Whole K in one block: no accumulator round-trip, direct store.
    o_ref[...] = (jnp.dot(x_ref[...], w_ref[...],
                          preferred_element_type=jnp.float32)
                  + b_ref[...]).astype(o_ref.dtype)


def _proj_kernel_multi_k(x_ref, w_ref, b_ref, o_ref, acc_ref):
    @pl.when(pl.program_id(1) == 0)
    def _():
        acc_ref[...] = jnp.zeros_like(acc_ref)

    acc_ref[...] += jnp.dot(x_ref[...], w_ref[...],
                            preferred_element_type=jnp.float32)

    @pl.when(pl.program_id(1) == pl.num_programs(1) - 1)
    def _():
        o_ref[...] = (acc_ref[...] + b_ref[...]).astype(o_ref.dtype)


# ---------------------------------------------------------------------------
# Tiled patch projection:  out = patches @ weight + bias
# ---------------------------------------------------------------------------
def patch_projection(patches, weight2d, bias, *, out_dtype=jnp.float32):
    """patches: (M, K), weight2d: (K, H), bias: (H,)  ->  (M, H) in out_dtype.

    Compute dtype is bf16 (f32 accumulation on the MXU); pass
    out_dtype=jnp.bfloat16 when the downstream stack is bf16.
    """
    M, K = patches.shape
    H = weight2d.shape[1]
    out_bytes = jnp.dtype(out_dtype).itemsize

    x = patches if patches.dtype == jnp.bfloat16 else patches.astype(jnp.bfloat16)
    w = weight2d.astype(jnp.bfloat16)
    b = bias.astype(jnp.float32).reshape(1, H)

    # --- K tiling: only when the bf16 weight block would not fit comfortably
    #     in VMEM (never triggers for ViT-size K = C*P*P). ---------------------
    if K * H * 2 <= 6 * 1024 * 1024:
        tk, Kp, num_k = K, K, 1
    else:
        # Prefer a tk that divides K so the big activation tensor needs no pad.
        tk = next((t for t in (512, 384, 256, 128) if K % t == 0), 512)
        Kp = _round_up(K, tk)
        if Kp != K:
            # Keep the zero-pad for correctness of the partial last K block.
            x = jnp.pad(x, ((0, 0), (0, Kp - K)))
            w = jnp.pad(w, ((0, Kp - K), (0, 0)))
        num_k = Kp // tk

    # --- M tiling: >=2 tiles for megacore, tm % 16 == 0, VMEM-bounded --------
    if M > 16:
        tm = min(1024, _round_up(pl.cdiv(M, 2), 16))
    else:
        tm = _round_up(M, 8)

    def _est_vmem(tm_):
        est = 2 * (tm_ * tk * 2 + tk * H * 2 + H * 4 + tm_ * H * out_bytes)
        if num_k > 1:
            est += tm_ * H * 4        # f32 accumulator scratch
        return est

    while tm > 256 and _est_vmem(tm) > 20 * 1024 * 1024:
        tm = _round_up(tm // 2, 16)
    num_m = pl.cdiv(M, tm)
    est_vmem = _est_vmem(tm)

    # --- compiler params ------------------------------------------------------
    compiler_kwargs = {}
    if est_vmem > 24 * 1024 * 1024:
        # Only override the known-good default for genuinely big tiles; derive
        # the ceiling from the part's physical VMEM (64 MiB on v7x) - headroom.
        try:
            phys = getattr(pltpu.get_tpu_info(), "vmem_capacity_bytes",
                           64 * 1024 * 1024)
        except Exception:  # pragma: no cover - defensive, CPU/interp fallback
            phys = 64 * 1024 * 1024
        compiler_kwargs["vmem_limit_bytes"] = min(int(est_vmem * 1.25),
                                                  int(phys * 0.7))

    cost = pl.CostEstimate(
        flops=2 * M * Kp * H,
        transcendentals=0,
        bytes_accessed=M * Kp * 2 + Kp * H * 2 + H * 4 + M * H * out_bytes,
    )

    if num_k == 1:
        grid_spec = pltpu.PrefetchScalarGridSpec(
            num_scalar_prefetch=0,
            grid=(num_m,),
            in_specs=[
                pl.BlockSpec((tm, K), lambda i: (i, 0)),   # patches tile
                pl.BlockSpec((K, H), lambda i: (0, 0)),    # weight (resident)
                pl.BlockSpec((1, H), lambda i: (0, 0)),    # bias   (resident)
            ],
            out_specs=pl.BlockSpec((tm, H), lambda i: (i, 0)),
        )
        kernel = _proj_kernel_single_k
        dim_sem = ("parallel",)
    else:
        grid_spec = pltpu.PrefetchScalarGridSpec(
            num_scalar_prefetch=0,
            grid=(num_m, num_k),
            in_specs=[
                pl.BlockSpec((tm, tk), lambda i, k: (i, k)),
                pl.BlockSpec((tk, H), lambda i, k: (k, 0)),
                pl.BlockSpec((1, H), lambda i, k: (0, 0)),
            ],
            out_specs=pl.BlockSpec((tm, H), lambda i, k: (i, 0)),
            scratch_shapes=[pltpu.VMEM((tm, H), jnp.float32)],
        )
        kernel = _proj_kernel_multi_k
        dim_sem = ("parallel", "arbitrary")

    return pl.pallas_call(
        kernel,
        out_shape=jax.ShapeDtypeStruct((M, H), out_dtype),
        grid_spec=grid_spec,
        compiler_params=pltpu.CompilerParams(dimension_semantics=dim_sem,
                                             **compiler_kwargs),
        cost_estimate=cost,
    )(x, w, b)


# ---------------------------------------------------------------------------
# Glue: NCHW patch extraction (pure layout, no compute), done in compute dtype
# ---------------------------------------------------------------------------
def extract_patches_nchw(x, patch, *, compute_dtype=jnp.bfloat16):
    B, C, Hh, Ww = x.shape
    hp, wp = Hh // patch, Ww // patch
    # Cast BEFORE the transpose: halves the re-layout's HBM write and removes
    # the separate cast pass in front of the kernel.
    x = x.astype(compute_dtype)
    x = x.reshape(B, C, hp, patch, wp, patch)
    x = x.transpose(0, 2, 4, 1, 3, 5)               # (B, hp, wp, C, p, p)
    return x.reshape(B * hp * wp, C * patch * patch), hp * wp


# ---------------------------------------------------------------------------
# PatchEmbeddings.forward
# ---------------------------------------------------------------------------
def patch_embeddings_forward(params, image_size, patch_size, pixel_values,
                             interpolate_pos_encoding=False,
                             out_dtype=jnp.float32):
    B, C, Hh, Ww = pixel_values.shape
    if not interpolate_pos_encoding:
        if Hh != image_size[0] or Ww != image_size[1]:
            raise ValueError(
                f"Input image size ({Hh}*{Ww}) doesn't match model "
                f"({image_size[0]}*{image_size[1]}).")
    embed_dim = params["proj_w"].shape[0]
    # Conv2d(kernel=stride=patch) weight (O, I, P, P) -> (K, O) matmul weight.
    w2d = params["proj_w"].reshape(embed_dim, -1).T
    patches, num_patches = extract_patches_nchw(pixel_values, patch_size)
    proj = patch_projection(patches, w2d, params["proj_b"],
                            out_dtype=out_dtype)          # (B*N, H) Pallas
    return proj.reshape(B, num_patches, embed_dim)        # == flatten(2).transpose(1,2)


# ---------------------------------------------------------------------------
# Pure-JAX reference (XLA conv) for verification
# ---------------------------------------------------------------------------
def reference_forward(params, patch_size, pixel_values):
    B = pixel_values.shape[0]
    embed_dim = params["proj_w"].shape[0]
    y = jax.lax.conv_general_dilated(
        pixel_values, params["proj_w"],
        window_strides=(patch_size, patch_size), padding="VALID",
        dimension_numbers=("NCHW", "OIHW", "NCHW"))
    return y.reshape(B, embed_dim, -1).transpose(0, 2, 1) + params["proj_b"]


if __name__ == "__main__":
    # Small config: image 16x16, patch 4, 4 channels, hidden 32, batch 2.
    batch, num_channels, image_size, patch_size, embed_dim = 2, 4, 16, 4, 32
    num_patches = (image_size // patch_size) ** 2            # 16

    key = jax.random.PRNGKey(0)
    k_w, k_b, k_x = jax.random.split(key, 3)
    params = {
        "proj_w": 0.02 * jax.random.normal(
            k_w, (embed_dim, num_channels, patch_size, patch_size), jnp.float32),
        "proj_b": 0.01 * jax.random.normal(k_b, (embed_dim,), jnp.float32),
    }
    pixel_values = jax.random.normal(
        k_x, (batch, num_channels, image_size, image_size), jnp.float32)

    fwd = jax.jit(lambda p, x: patch_embeddings_forward(
        p, (image_size, image_size), patch_size, x))

    out = jax.block_until_ready(fwd(params, pixel_values))
    assert out.shape == (batch, num_patches, embed_dim), out.shape

    ref = jax.block_until_ready(reference_forward(params, patch_size, pixel_values))
    # bf16 compute (f32 accumulation) vs f32 XLA conv -> relaxed tolerance.
    max_err = float(jnp.max(jnp.abs(out - ref)))
    assert jnp.allclose(out, ref, atol=1e-2, rtol=1e-2), max_err

    print("KERNEL_OK")
</pallas_src>

<mosaic_0001>
module attributes {stable_mosaic.version = 11 : i64} {
  func.func @_proj_kernel_single_k(%arg0: i32, %arg1: memref<16x64xbf16, #tpu.memory_space<vmem>>, %arg2: memref<64x32xbf16, #tpu.memory_space<vmem>>, %arg3: memref<1x32xf32, #tpu.memory_space<vmem>>, %arg4: memref<16x32xf32, #tpu.memory_space<vmem>>) attributes {dimension_semantics = [#tpu.dimension_semantics<parallel>], iteration_bounds = array<i64: 2>, scalar_prefetch = 0 : i64, scratch_operands = 0 : i64, tpu.core_type = #tpu.core_type<tc>, window_params = [{transform_indices = @transform_0, window_bounds = array<i64: 16, 64>}, {pipeline_mode = #tpu.pipeline_mode<synchronous>, transform_indices = @transform_1, window_bounds = array<i64: 64, 32>}, {pipeline_mode = #tpu.pipeline_mode<synchronous>, transform_indices = @transform_2, window_bounds = array<i64: 1, 32>}, {transform_indices = @transform_3, window_bounds = array<i64: 16, 32>}]} {
    %c0 = arith.constant 0 : index
    %c0_0 = arith.constant 0 : index
    %0 = vector.load %arg1[%c0, %c0_0] : memref<16x64xbf16, #tpu.memory_space<vmem>>, vector<16x64xbf16>
    %c0_1 = arith.constant 0 : index
    %c0_2 = arith.constant 0 : index
    %1 = vector.load %arg2[%c0_1, %c0_2] : memref<64x32xbf16, #tpu.memory_space<vmem>>, vector<64x32xbf16>
    %cst = arith.constant dense<0.000000e+00> : vector<16x32xf32>
    %2 = tpu.matmul %0, %1, %cst {dimension_numbers = #tpu.dot_dimension_numbers<[1], [0], [0], [1], [0, 0, 1, 1], [], []>} : vector<16x64xbf16>, vector<64x32xbf16>, vector<16x32xf32> -> vector<16x32xf32>
    %c0_3 = arith.constant 0 : index
    %c0_4 = arith.constant 0 : index
    %3 = vector.load %arg3[%c0_3, %c0_4] : memref<1x32xf32, #tpu.memory_space<vmem>>, vector<1x32xf32>
    %4 = vector.broadcast %3 : vector<1x32xf32> to vector<16x32xf32>
    %5 = arith.addf %2, %4 : vector<16x32xf32>
    %c0_5 = arith.constant 0 : index
    %c0_6 = arith.constant 0 : index
    %6 = vector.load %arg4[%c0_5, %c0_6] : memref<16x32xf32, #tpu.memory_space<vmem>>, vector<16x32xf32>
    tpu.vector_store %arg4[%c0_5, %c0_6], %5 {strides = array<i32>} : memref<16x32xf32, #tpu.memory_space<vmem>>, vector<16x32xf32>,
    return
  }
  func.func @transform_0(%arg0: i32) -> (i32, i32) {
    %c0_i32 = arith.constant 0 : i32
    %c0_i32_0 = arith.constant 0 : i32
    return %arg0, %c0_i32 : i32, i32
  }
  func.func @transform_1(%arg0: i32) -> (i32, i32) {
    %c0_i32 = arith.constant 0 : i32
    %c0_i32_0 = arith.constant 0 : i32
    %c0_i32_1 = arith.constant 0 : i32
    return %c0_i32, %c0_i32_0 : i32, i32
  }
  func.func @transform_2(%arg0: i32) -> (i32, i32) {
    %c0_i32 = arith.constant 0 : i32
    %c0_i32_0 = arith.constant 0 : i32
    %c0_i32_1 = arith.constant 0 : i32
    return %c0_i32, %c0_i32_0 : i32, i32
  }
  func.func @transform_3(%arg0: i32) -> (i32, i32) {
    %c0_i32 = arith.constant 0 : i32
    %c0_i32_0 = arith.constant 0 : i32
    return %arg0, %c0_i32 : i32, i32
  }
}

</mosaic_0001>

<bundles_post_ra>
// kernel: _lambda_.1
= control target key start
LH: loop header
LB: loop body
LE: loop exit
PB: predicated region body
PF: predicated region fallthrough
CT: control target
= control target key end

     0   :  { %8 = vsyncpa [#allocation3], 0  ;;  %s634_s0 = inlined_call_operand.vmem [shape: bf16[32,64], index: 0, kind: input, shape index: {}]   ;;  %s635_s1 = inlined_call_operand.vmem [shape: bf16[64,32], index: 1, kind: input, shape index: {}]   ;;  %s636_s2 = inlined_call_operand.vmem [shape: f32[1,32], index: 2, kind: input, shape index: {}]   ;;  %s637_s3 = inlined_call_operand.hbm [shape: f32[32,32], index: 3, kind: output, shape index: {}]  }
   0x1   :  { %10 = vsyncpa [#allocation3 + $0x1], 0  ;;  %s517_s12 = smov 0   ;;  %s519_s13 = smov 0  }
   0x2   :  { %s521_s14 = smov 0   ;;  %s523_s15 = smov 0  }
   0x3 LB: > { %s538_s16 = sadd.s32 4294967295, %s490_s15   ;;  %s343_s17 = sadd.s32 4294967294, %s490_s15   ;;  %s490_s15 = sphi %s523_s15, %s643_s15   ;;  %s486_s14 = sphi %s521_s14, %s642_s14   ;;  %s482_s13 = sphi %s519_s13, %s641_s13   ;;  %s478_s12 = sphi %s517_s12, %s640_s12  }
   0x4   : > { %s542_s18 = sadd.s32 1, %s490_s15   ;;  %s91_s19 = sadd.s32 1, %s486_s14 }
   0x5   : > { %s88_s20 = ssub.s32 %s490_s15, %s542_s18  ;;  %p101_p0 = scmp.ne.s32.totalorder %s486_s14, %s482_s13 }
   0x6   : > { %p89_p1 = scmp.eq.s32.totalorder %s88_s20, 0  ;;  %p102_p2 = scmp.eq.s32.totalorder %s538_s16, 1 }
   0x7   : > { %p107_p3 = scmp.ne.s32.totalorder %s482_s13, %s478_s12  ;;  %p108_p4 = scmp.eq.s32.totalorder %s343_s17, 1 }
   0x8   : > { %s553_s21 = scalar_select %p89_p1, %s486_s14, %s91_s19  }
   0x9   : > { %p555_p5 = por %p102_p2, %p101_p0  ;;  %p559_p6 = por %p108_p4, %p107_p3 }
   0xa   : > { %p346_p7 = scmp.ge.s32.totalorder %s490_s15, 1  ;;  %p141_p8 = scmp.lt.s32.totalorder %s490_s15, 3 }
   0xc   : > { %p142_p9 = pnand %p346_p7, %p141_p8 }
   0xd   : > { %v423_v0 = vld [vmem:[%s635_s1] sm:$0xff] (!%p142_p9)   ;;  %v492_v1 = vmov (!%p142_p9), 0.0   ;;  %v424_v2 = vld [vmem:[%s635_s1 + $0x8] sm:$0xff] (!%p142_p9)   ;;  %vm493_vm0 = vmmov (!%p142_p9), 0   ;;  %s348_s28 = sshll.u32 (!%p142_p9), %s538_s16, 1  ;;  %v425_v3 = vld [vmem:[%s635_s1 + $0x10] sm:$0xff] (!%p142_p9)  }
   0xe   : > { %145 = sbr.rel (%p142_p9) target bundleno = 261 (0x105), region = 32  ;;  %368 = vmatprep.subr.bf16.mxu0 (!%p142_p9), %v492_v1  ;;  %376 = vmatprep.mubr.msk.bf16.mxu0 (!%p142_p9), %vm493_vm0, %v492_v1  ;;  %p166_p10 = scmp.lt.s32.totalorder (!%p142_p9), %s348_s28, 3  ;;  %v426_v4 = vld [vmem:[%s635_s1 + $0x18] sm:$0xff] (!%p142_p9)   ;;  %vm219_vm1 = vcmask (!%p142_p9), 523264   ;;  %v350_v6 = vld [vmem:[%s636_s2] ss:$0 sm:$0xff] (!%p142_p9) }
   0xf   : > { %369 = vmatpush3.bf16.msra.mxu0 (!%p142_p9), %v423_v0  ;;  %s162_s10 = sand.u32 (!%p142_p9), 1, %s482_s13   ;;  %s362_s25 = sshll.u32 (!%p142_p9), %s538_s16, 8  ;;  %vm264_vm2 = vcmask (!%p142_p9), 261120  }
  0x10   : > { %370 = vmatprep.subr.bf16.mxu0 (!%p142_p9), %v492_v1  ;;  %s347_s11 = sshll.u32 (!%p142_p9), %s162_s10, 4  ;;  %s593_s16 = scalar_lea.sflag (!%p142_p9), [#allocation3], %s162_s10 }
  0x11   : > { %s164_s20 = scalar_lea.vmem (!%p142_p9), [#allocation2], %s347_s11  ;;  %s494_s30 = smov (!%p142_p9), [#allocation2]  }
  0x12   : > { %s281_s24 = sshll.u32 (!%p142_p9), %s164_s20, 4  ;;  %s586_s24 = int_to_ptr.vmem [resolvable:$true] %s281_s24 }
  0x13   : > { %371 = vmatpush3.bf16.msra.mxu0 (!%p142_p9), %v424_v2  ;;  %s428_s29 = scalar_lea.vmem (!%p142_p9), %s586_s24, 256 }
  0x14   : > { %372 = vmatprep.subr.bf16.mxu0 (!%p142_p9), %v492_v1  ;;  %p429_p11 = scmp.ne.s32.totalorder (!%p142_p9), %s586_s24, %s428_s29 }
  0x15   : > { %s645_s28 = smov (!%p166_p10, %s348_s28), 3 }
  0x16   : > { %s349_s4 = sshll.u32 %s645_s28, 2  ;;  %s591_s28 = scalar_lea.hbm %s637_s3, %s362_s25 }
  0x17   : > { %s169_s7 = scalar_lea.vmem %s634_s0, %s349_s4  ;;  %373 = vmatpush3.bf16.msra.mxu0 %v425_v3  ;;  %p430_p12 = pnand %p429_p11, %p555_p5 }
  0x18   : > { %374 = vmatprep.subr.bf16.mxu0 %v492_v1  ;;  %v427_v5 = vld [vmem:[%s169_s7] sm:$0xff]   ;;  %s432_s4 = sshll.u32 %s494_s30, 4  ;;  %s433_s4 = int_to_ptr.vmem [resolvable:$false] %s432_s4 }
  0x19   : > { %p431_p13 = pneg %p430_p12  ;;  %s434_s5 = scalar_lea.vmem %s433_s4, 512 }
  0x1a   : > { %p435_p0 = scmp.lt.s32.totalorder %s586_s24, %s433_s4  ;;  %p436_p1 = scmp.lt.s32.totalorder %s434_s5, %s428_s29 }
  0x1b   : > { %375 = vmatpush3.bf16.msra.mxu0 %v426_v4 }
  0x1c   : > { %p437_p2 = por %p436_p1, %p435_p0 }
  0x1e   : > { %377 = vmatmul.mubr.msk.bf16.vlgmr.msra.gmra.mrb[0].mxu0 %vm219_vm1, %v427_v5  ;;  %p438_p3 = pnand %p437_p2, %p431_p13 }
  0xf1   : > { %v257_v7 = vpop.f32.mrb[0].mxu0 }
  0xf2   : > { %v258_v8 = vadd.f32 %v350_v6, %v257_v7  ;;  %v378_v9 = vpop.f32.mrb[1].mxu0 }
  0xf3   : > { %v260_v10 = vpop.f32.mrb[2].mxu0 }
  0xf4   : > { %265 = vst.msk [vmem:[%s164_s20] sm:$0xff] %vm264_vm2, %v258_v8  ;;  %v261_v11 = vadd.f32 %v350_v6, %v260_v10  ;;  %v379_v12 = vpop.f32.mrb[3].mxu0 }
  0xf6   : > { %266 = vst.msk [vmem:[%s164_s20 + $0x8] sm:$0xff] %vm264_vm2, %v261_v11 }
  0xf7   : > { %441 = shalt.err (!%p438_p3)
}
  0xf8   : > { %s442_s6 = scalar_lea.hbm %s591_s28, 256  ;;  %s446_s9 = scalar_lea.hbm %s637_s3, 512 }
  0xf9   : > { %p443_p4 = scmp.ne.s32.totalorder %s591_s28, %s442_s6  ;;  %p447_p9 = scmp.lt.u32.totalorder %s591_s28, %s637_s3 }
  0xfa   : > { %p448_p10 = scmp.lt.u32.totalorder %s446_s9, %s442_s6  ;;  %p450_p12 = scmp.lt.u32.totalorder %s442_s6, %s591_s28 }
  0xfb   : > { %p444_p7 = pnand %p443_p4, %p555_p5 }
  0xfc   : > { %p449_p11 = por %p448_p10, %p447_p9 }
  0xfd   : > { %p445_p8 = pneg %p444_p7 }
  0xfe   : > { %p451_p13 = por %p450_p12, %p449_p11 }
 0x100   : > { %p452_p0 = pnand %p451_p13, %p445_p8 }
 0x102   : > { %455 = shalt.err (!%p452_p0)
}
 0x103   : > { %s495_s17 = smov 128   ;;  %s496_s19 = smov 8  }
 0x104   : > { %380 = dma.vmem_to_hbm [thread:$0]  (%p555_p5), %s586_s24, 256, %s591_s28, %s593_s16, %s495_s17, %s495_s17, %s496_s19  }
 0x105 PF: > { %p386_p1 = scmp.ge.s32.totalorder %s490_s15, 2  ;;  %s296_s20 = sand.u32 1, %s478_s12  }
 0x106   : > { %s297_s25 = scalar_lea.sflag [#allocation3], %s296_s20 }
 0x107   : > { %p383_p2 = pnand %p386_p1, %p559_p6 }
 0x109   : > { %473 = dma.done.wait (!%p383_p2), %s297_s25, 256  }
 0x10a   : > { %475 = vsyncadd (!%p383_p2), %s297_s25, 4294967040  ;;  %p13_p3 = scmp.ge.s32.totalorder %s542_s18, 4   ;;  %s640_s12 = smov %s482_s13 }
 0x10b   : > { %s641_s13 = smov %s486_s14  ;;  %s642_s14 = smov %s553_s21 }
 0x10c   : > { %s643_s15 = smov %s542_s18  ;;  %15 = sbr.rel (!%p13_p3) target bundleno = 3 (0x3), region = 67 }
 0x113   :  { %302 = vsyncpa [#allocation3], 1 }
 0x114   :  { %304 = vsyncpa [#allocation3 + $0x1], 1 }

</bundles_post_ra>
